<compile_context>
chip_gen: v7x
topology: tpu7x:2x2x1
jax: 0.10.0
libtpu: 0.0.40
codegen_flags: <defaults>
</compile_context>

<pallas_src>
import functools

import jax
import jax.numpy as jnp
from jax import lax
from jax.experimental import pallas as pl
from jax.experimental.pallas import tpu as pltpu


def energy_kernel(emb_ref, tgt_ref, w_ref, b_ref, len_ref, out_ref):
    tb = out_ref.shape[-1]            # batch tile size
    rows = emb_ref.shape[0]           # tb * S sentences in this tile (batch-major)
    s_len = rows // tb
    m = w_ref.shape[-1]
    m_f = float(m)

    # Per-sentence, per-module scores on the MXU: (TB*S, D) @ (D, M), bf16 in,
    # f32 accumulate; bias folded in after the dot.
    scores = jnp.dot(emb_ref[...], w_ref[...],
                     preferred_element_type=jnp.float32) + b_ref[...]
    sig = jax.nn.sigmoid(scores)                                  # (TB*S, M) f32

    # Pointwise energy  -t*s - (1-t)*(1-s) == s*(1-2t) + (t-1).
    # Reduce over the M modules first (lane reduction) and hoist the t-only
    # term:   sum_m e = (1-2t) * sum_m sigmoid(score_m) + M*(t-1)
    # TODO(synk): sentence masking (mask_value / targets_mask) is not applied;
    # all S positions are treated as valid, matching the synthetic setup.
    t = tgt_ref[...]                                              # (TB*S, 1) f32
    row_sig = jnp.sum(sig, axis=1, keepdims=True)                 # (TB*S, 1)
    row_e = row_sig * (1.0 - 2.0 * t) + m_f * (t - 1.0)           # (TB*S, 1)

    # Per-document sum over the S sentences of each batch row (rows are
    # batch-major, so this reshape only splits the leading dim).
    col = jnp.sum(row_e.reshape(tb, s_len, 1), axis=1)            # (TB, 1)

    # Transpose the per-batch column onto lanes with a tiny identity matmul
    # (MXU is otherwise idle here) so the final store is a dense (1, TB) row.
    r_io = lax.broadcasted_iota(jnp.int32, (tb, tb), 0)
    c_io = lax.broadcasted_iota(jnp.int32, (tb, tb), 1)
    scatter = jnp.where(r_io == c_io, col, 0.0)                   # diag(col)
    row = jnp.dot(jnp.ones((1, tb), jnp.float32), scatter,
                  preferred_element_type=jnp.float32)             # (1, TB)

    inv_len = pl.reciprocal(len_ref[0], approx=True)              # (1, TB), EUP
    out_ref[0] = row * inv_len                                    # lane-dense store


def _pick_batch_tile(batch, seq, dim, max_tile_bytes=4 << 20):
    """Largest batch tile that divides B, keeps the bf16 emb tile small and
    keeps the sub-block sublane count 16-aligned (bf16 native tiling)."""
    candidates = [
        tb for tb in range(1, batch + 1)
        if batch % tb == 0
        and ((tb * seq) % 16 == 0 or tb == batch)
        and tb * seq * dim * 2 <= max_tile_bytes
    ]
    return max(candidates) if candidates else batch


@functools.partial(jax.jit, static_argnames=("batch_tile",))
def energy_model2_forward(emb, targets, weights, biases, lengths, *,
                          batch_tile=None):
    """emb: (B,S,D), targets: (B,S), weights: (M,D), biases: (M,), lengths: (B,).
    Returns total_energy: (B,) f32 (= sum over the M submodule energies)."""
    B, S, D = emb.shape
    M = weights.shape[0]
    tb = batch_tile if batch_tile is not None else _pick_batch_tile(B, S, D)
    if B % tb or ((tb * S) % 16 and tb != B):
        raise ValueError(f"invalid batch tile {tb} for B={B}, S={S}")
    n_tiles = B // tb

    # Wrapper-side layout plumbing (cheap): batch-major flatten, weight
    # transpose, bf16 matmul operands; targets / bias / lengths stay f32.
    emb_flat = emb.reshape(B * S, D).astype(jnp.bfloat16)
    w_dm = weights.astype(jnp.bfloat16).T                     # (D, M)
    b_row = biases.reshape(1, M).astype(jnp.float32)
    t_flat = targets.reshape(B * S, 1).astype(jnp.float32)
    lens = lengths.astype(jnp.float32).reshape(n_tiles, 1, tb)  # lane-dense rows

    out = pl.pallas_call(
        energy_kernel,
        out_shape=jax.ShapeDtypeStruct((n_tiles, 1, tb), jnp.float32),
        grid=(n_tiles,),
        in_specs=[
            pl.BlockSpec((tb * S, D), lambda i: (i, 0)),       # emb tile
            pl.BlockSpec((tb * S, 1), lambda i: (i, 0)),       # targets tile
            pl.BlockSpec((D, M), lambda i: (0, 0)),            # weights (resident)
            pl.BlockSpec((1, M), lambda i: (0, 0)),            # biases  (resident)
            pl.BlockSpec((1, 1, tb), lambda i: (i, 0, 0)),     # lengths row
        ],
        out_specs=pl.BlockSpec((1, 1, tb), lambda i: (i, 0, 0)),
        compiler_params=pltpu.CompilerParams(
            dimension_semantics=("parallel",),
            vmem_limit_bytes=32 * 1024 * 1024),
    )(emb_flat, t_flat, w_dm, b_row, lens)
    return out.reshape(B)


def _reference(emb, targets, weights, biases, lengths):
    # Same math in plain XLA, with matmul inputs rounded to bf16 exactly like
    # the kernel (f32 accumulation), so the comparison isolates kernel bugs.
    emb_r = emb.astype(jnp.bfloat16).astype(jnp.float32)
    w_r = weights.astype(jnp.bfloat16).astype(jnp.float32)
    scores = jnp.einsum("bsd,md->bsm", emb_r, w_r) + biases.reshape(1, 1, -1)
    s = jax.nn.sigmoid(scores)
    t = targets[:, :, None]
    e = (-t * s - (1.0 - t) * (1.0 - s)).sum(axis=1) / lengths[:, None]
    return e.sum(axis=1)


if __name__ == "__main__":
    # Small shapes consistent with the module: 16 documents of 8 sentences,
    # 32-d sentence embeddings, M=4 submodules (salience / coverage / position
    # / word-count analogues).  batch_tile=8 -> a 2-step "parallel" grid so the
    # pipeline / megacore path is actually exercised.
    B, S, D, M = 16, 8, 32, 4

    key = jax.random.PRNGKey(0)
    k1, k2, k3 = jax.random.split(key, 3)
    emb = jax.random.normal(k1, (B, S, D), dtype=jnp.float32)
    targets = jax.nn.sigmoid(jax.random.normal(k2, (B, S), dtype=jnp.float32))
    # TODO(synk): the original submodules (salience RNN, coverage module,
    # position, word-count) are external nn.Modules; they are replaced by
    # deterministic linear scorers with the same per-module energy reduction.
    weights = 0.1 * jax.random.normal(k3, (M, D), dtype=jnp.float32)
    biases = 0.01 * jnp.arange(M, dtype=jnp.float32)
    lengths = jnp.full((B,), float(S), dtype=jnp.float32)

    out = jax.block_until_ready(
        energy_model2_forward(emb, targets, weights, biases, lengths,
                              batch_tile=8))
    ref = _reference(emb, targets, weights, biases, lengths)
    assert out.shape == (B,)
    assert jnp.allclose(out, ref, atol=2e-3, rtol=2e-3), (out, ref)
    print("KERNEL_OK")
</pallas_src>

<mosaic_0001>
module attributes {stable_mosaic.version = 11 : i64} {
  func.func @energy_kernel(%arg0: i32, %arg1: memref<64x32xbf16, #tpu.memory_space<vmem>>, %arg2: memref<64x1xf32, #tpu.memory_space<vmem>>, %arg3: memref<32x4xbf16, #tpu.memory_space<vmem>>, %arg4: memref<1x4xf32, #tpu.memory_space<vmem>>, %arg5: memref<1x1x8xf32, #tpu.memory_space<vmem>>, %arg6: memref<1x1x8xf32, #tpu.memory_space<vmem>>) attributes {dimension_semantics = [#tpu.dimension_semantics<parallel>], iteration_bounds = array<i64: 2>, scalar_prefetch = 0 : i64, scratch_operands = 0 : i64, tpu.core_type = #tpu.core_type<tc>, window_params = [{transform_indices = @transform_0, window_bounds = array<i64: 64, 32>}, {transform_indices = @transform_1, window_bounds = array<i64: 64, 1>}, {pipeline_mode = #tpu.pipeline_mode<synchronous>, transform_indices = @transform_2, window_bounds = array<i64: 32, 4>}, {pipeline_mode = #tpu.pipeline_mode<synchronous>, transform_indices = @transform_3, window_bounds = array<i64: 1, 4>}, {transform_indices = @transform_4, window_bounds = array<i64: 1, 1, 8>}, {transform_indices = @transform_5, window_bounds = array<i64: 1, 1, 8>}]} {
    %c0 = arith.constant 0 : index
    %c0_0 = arith.constant 0 : index
    %0 = vector.load %arg1[%c0, %c0_0] : memref<64x32xbf16, #tpu.memory_space<vmem>>, vector<64x32xbf16>
    %c0_1 = arith.constant 0 : index
    %c0_2 = arith.constant 0 : index
    %1 = vector.load %arg3[%c0_1, %c0_2] : memref<32x4xbf16, #tpu.memory_space<vmem>>, vector<32x4xbf16>
    %cst = arith.constant dense<0.000000e+00> : vector<64x4xf32>
    %2 = tpu.matmul %0, %1, %cst {dimension_numbers = #tpu.dot_dimension_numbers<[1], [0], [0], [1], [0, 0, 1, 1], [], []>} : vector<64x32xbf16>, vector<32x4xbf16>, vector<64x4xf32> -> vector<64x4xf32>
    %c0_3 = arith.constant 0 : index
    %c0_4 = arith.constant 0 : index
    %3 = vector.load %arg4[%c0_3, %c0_4] : memref<1x4xf32, #tpu.memory_space<vmem>>, vector<1x4xf32>
    %4 = vector.broadcast %3 : vector<1x4xf32> to vector<64x4xf32>
    %5 = arith.addf %2, %4 : vector<64x4xf32>
    %6 = arith.negf %5 : vector<64x4xf32>
    %7 = math.exp %6 : vector<64x4xf32>
    %cst_5 = arith.constant 1.000000e+00 : f32
    %8 = vector.broadcast %cst_5 : f32 to vector<64x4xf32>
    %9 = arith.addf %8, %7 : vector<64x4xf32>
    %10 = arith.divf %8, %9 : vector<64x4xf32>
    %c0_6 = arith.constant 0 : index
    %c0_7 = arith.constant 0 : index
    %11 = vector.load %arg2[%c0_6, %c0_7] : memref<64x1xf32, #tpu.memory_space<vmem>>, vector<64x1xf32>
    %cst_8 = arith.constant dense<0.000000e+00> : vector<64xf32>
    %12 = vector.multi_reduction <add>, %10, %cst_8 [1] : vector<64x4xf32> to vector<64xf32>
    %13 = vector.shape_cast %12 : vector<64xf32> to vector<64x1xf32>
    %cst_9 = arith.constant 2.000000e+00 : f32
    %14 = vector.broadcast %cst_9 : f32 to vector<64x1xf32>
    %15 = arith.mulf %14, %11 : vector<64x1xf32>
    %cst_10 = arith.constant 1.000000e+00 : f32
    %16 = vector.broadcast %cst_10 : f32 to vector<64x1xf32>
    %17 = arith.subf %16, %15 : vector<64x1xf32>
    %18 = arith.mulf %13, %17 : vector<64x1xf32>
    %cst_11 = arith.constant 1.000000e+00 : f32
    %19 = vector.broadcast %cst_11 : f32 to vector<64x1xf32>
    %20 = arith.subf %11, %19 : vector<64x1xf32>
    %cst_12 = arith.constant 4.000000e+00 : f32
    %21 = vector.broadcast %cst_12 : f32 to vector<64x1xf32>
    %22 = arith.mulf %21, %20 : vector<64x1xf32>
    %23 = arith.addf %18, %22 : vector<64x1xf32>
    %24 = vector.shape_cast %23 : vector<64x1xf32> to vector<8x8x1xf32>
    %cst_13 = arith.constant dense<0.000000e+00> : vector<8x1xf32>
    %25 = vector.multi_reduction <add>, %24, %cst_13 [1] : vector<8x8x1xf32> to vector<8x1xf32>
    %26 = tpu.iota {dimensions = array<i32: 0>} : vector<8x8xi32>
    %27 = tpu.iota {dimensions = array<i32: 1>} : vector<8x8xi32>
    %28 = arith.cmpi eq, %26, %27 : vector<8x8xi32>
    %cst_14 = arith.constant 0.000000e+00 : f32
    %29 = vector.shape_cast %25 : vector<8x1xf32> to vector<8x1xf32>
    %30 = vector.broadcast %29 : vector<8x1xf32> to vector<8x8xf32>
    %31 = vector.broadcast %cst_14 : f32 to vector<8x8xf32>
    %32 = arith.select %28, %30, %31 : vector<8x8xi1>, vector<8x8xf32>
    %cst_15 = arith.constant 1.000000e+00 : f32
    %33 = vector.broadcast %cst_15 : f32 to vector<1x8xf32>
    %cst_16 = arith.constant dense<0.000000e+00> : vector<1x8xf32>
    %34 = tpu.matmul %33, %32, %cst_16 {dimension_numbers = #tpu.dot_dimension_numbers<[1], [0], [0], [1], [0, 0, 1, 1], [], []>} : vector<1x8xf32>, vector<8x8xf32>, vector<1x8xf32> -> vector<1x8xf32>
    %c0_17 = arith.constant 0 : index
    %c0_18 = arith.constant 0 : index
    %c0_19 = arith.constant 0 : index
    %35 = vector.load %arg5[%c0_17, %c0_18, %c0_19] : memref<1x1x8xf32, #tpu.memory_space<vmem>>, vector<1x1x8xf32>
    %36 = vector.shape_cast %35 : vector<1x1x8xf32> to vector<1x8xf32>
    %37 = tpu.reciprocal %36 {approx = true} : vector<1x8xf32> -> vector<1x8xf32>
    %38 = arith.mulf %34, %37 : vector<1x8xf32>
    %c0_20 = arith.constant 0 : index
    %c0_21 = arith.constant 0 : index
    %c0_22 = arith.constant 0 : index
    %39 = vector.load %arg6[%c0_20, %c0_21, %c0_22] : memref<1x1x8xf32, #tpu.memory_space<vmem>>, vector<1x1x8xf32>
    %40 = vector.shape_cast %39 : vector<1x1x8xf32> to vector<1x8xf32>
    %41 = vector.shape_cast %38 : vector<1x8xf32> to vector<1x1x8xf32>
    tpu.vector_store %arg6[%c0_20, %c0_21, %c0_22], %41 {strides = array<i32>} : memref<1x1x8xf32, #tpu.memory_space<vmem>>, vector<1x1x8xf32>,
    return
  }
  func.func @transform_0(%arg0: i32) -> (i32, i32) {
    %c0_i32 = arith.constant 0 : i32
    %c0_i32_0 = arith.constant 0 : i32
    return %arg0, %c0_i32 : i32, i32
  }
  func.func @transform_1(%arg0: i32) -> (i32, i32) {
    %c0_i32 = arith.constant 0 : i32
    %c0_i32_0 = arith.constant 0 : i32
    return %arg0, %c0_i32 : i32, i32
  }
  func.func @transform_2(%arg0: i32) -> (i32, i32) {
    %c0_i32 = arith.constant 0 : i32
    %c0_i32_0 = arith.constant 0 : i32
    %c0_i32_1 = arith.constant 0 : i32
    return %c0_i32, %c0_i32_0 : i32, i32
  }
  func.func @transform_3(%arg0: i32) -> (i32, i32) {
    %c0_i32 = arith.constant 0 : i32
    %c0_i32_0 = arith.constant 0 : i32
    %c0_i32_1 = arith.constant 0 : i32
    return %c0_i32, %c0_i32_0 : i32, i32
  }
  func.func @transform_4(%arg0: i32) -> (i32, i32, i32) {
    %c0_i32 = arith.constant 0 : i32
    %c0_i32_0 = arith.constant 0 : i32
    %c0_i32_1 = arith.constant 0 : i32
    return %arg0, %c0_i32, %c0_i32_0 : i32, i32, i32
  }
  func.func @transform_5(%arg0: i32) -> (i32, i32, i32) {
    %c0_i32 = arith.constant 0 : i32
    %c0_i32_0 = arith.constant 0 : i32
    %c0_i32_1 = arith.constant 0 : i32
    return %arg0, %c0_i32, %c0_i32_0 : i32, i32, i32
  }
}

</mosaic_0001>

<bundles_post_ra>
// kernel: energy_model2_forward.1
= control target key start
LH: loop header
LB: loop body
LE: loop exit
PB: predicated region body
PF: predicated region fallthrough
CT: control target
= control target key end

     0   :  { %s940_s18 = smov 0   ;;  %s1007_s0 = inlined_call_operand.vmem [shape: bf16[128,32], index: 0, kind: input, shape index: {}]   ;;  %s1008_s1 = inlined_call_operand.vmem [shape: f32[128,1], index: 1, kind: input, shape index: {}]   ;;  %s1009_s2 = inlined_call_operand.vmem [shape: bf16[32,4], index: 2, kind: input, shape index: {}]   ;;  %s1010_s3 = inlined_call_operand.vmem [shape: f32[1,4], index: 3, kind: input, shape index: {}]   ;;  %s1011_s4 = inlined_call_operand.vmem [shape: f32[2,1,8], index: 4, kind: input, shape index: {}]   ;;  %s1012_s5 = inlined_call_operand.vmem [shape: f32[2,1,8], index: 5, kind: output, shape index: {}]  }
   0x1 LB: > { %s946_s19 = sadd.s32 4294967295, %s904_s18   ;;  %p779_p0 = scmp.ge.s32.totalorder %s904_s18, 1  ;;  %s904_s18 = sphi %s940_s18, %s15_s18  }
   0x2   : > { %p207_p1 = scmp.lt.s32.totalorder %s904_s18, 3 }
   0x4   : > { %p208_p2 = pnand %p779_p0, %p207_p1 }
   0x5   : > { %v858_v0 = vld [vmem:[%s1009_s2] sm:$0xff] (!%p208_p2)   ;;  %s780_s22 = sshll.u32 (!%p208_p2), %s946_s19, 3  ;;  %v859_v1 = vld [vmem:[%s1009_s2 + $0x8] sm:$0xff] (!%p208_p2)   ;;  %vm311_vm0 = vcmask (!%p208_p2), 261120   ;;  %vm445_vm1 = vcmask (!%p208_p2), 31744   ;;  %v906_v63 = vmov (!%p208_p2), 0  }
   0x6   : > { %211 = sbr.rel (%p208_p2) target bundleno = 796 (0x31c), region = 40  ;;  %p242_p3 = scmp.lt.s32.totalorder (!%p208_p2), %s780_s22, 15  ;;  %823 = vmatprep.subr.bf16.mxu0 (!%p208_p2), %v858_v0  ;;  %840 = vmatprep.subr.bf16.mxu1 (!%p208_p2), %v858_v0  ;;  %v784_v6 = vld [vmem:[%s1010_s3] ss:$0 sm:$0xff] (!%p208_p2)  ;;  %vm518_vm2 = vcmask (!%p208_p2), 7168   ;;  %vm908_vm3 = vmmov (!%p208_p2), 0  }
   0x7   : > { %824 = vmatpush3.bf16.msra.mxu0 (!%p208_p2), %v858_v0  ;;  %842 = vmatpush3.bf16.msra.mxu1 (!%p208_p2), %v858_v0  ;;  %vm612_vm4 = vcmask (!%p208_p2), 1041409   ;;  %vm614_vm5 = vcmask (!%p208_p2), 1042434   ;;  %vm616_vm6 = vcmask (!%p208_p2), 1043459   ;;  %vm618_vm7 = vcmask (!%p208_p2), 1044484   ;;  %p253_p4 = scmp.lt.s32.totalorder (!%p208_p2), %s946_s19, 1 }
   0x8   : > { %825 = vmatprep.subr.bf16.mxu0 (!%p208_p2), %v859_v1  ;;  %841 = vmatprep.subr.bf16.mxu1 (!%p208_p2), %v859_v1  ;;  %vm620_vm8 = vcmask (!%p208_p2), 1045509   ;;  %vm622_vm9 = vcmask (!%p208_p2), 1046534   ;;  %vm624_vm10 = vcmask (!%p208_p2), 1047559   ;;  %vm628_vm12 = vcmask (!%p208_p2), 64512  }
   0x9   : > { %857 = vset.pattern.permute.xlu1 (!%p208_p2), %v906_v63  ;;  %856 = vset.pattern.permute.xlu0 (!%p208_p2), %v906_v63  ;;  %vm705_vm13 = vcmask (!%p208_p2), 57344  }
   0xb   : > { %826 = vmatpush3.bf16.msra.mxu0 (!%p208_p2), %v859_v1  ;;  %843 = vmatpush3.bf16.msra.mxu1 (!%p208_p2), %v859_v1 }
   0xd   : > { %s1014_s22 = smov (!%p242_p3, %s780_s22), 15  ;;  %s1016_s19 = smov (!%p253_p4, %s946_s19), 1 }
   0xe   : > { %s781_s25 = sshll.u32 %s1014_s22, 2  ;;  %s783_s6 = sshll.u32 %s1014_s22, 3 }
   0xf   : > { %s245_s28 = scalar_lea.vmem %s1007_s0, %s781_s25  ;;  %s978_s9 = scalar_lea.vmem %s1008_s1, %s783_s6 }
  0x10   : > { %v860_v2 = vld [vmem:[%s245_s28] sm:$0xff]   ;;  %v861_v3 = vld [vmem:[%s245_s28 + $0x8] sm:$0xff]   ;;  %v862_v4 = vld [vmem:[%s245_s28 + $0x10] sm:$0xff]   ;;  %s255_s12 = scalar_lea.vmem %s1011_s4, %s1016_s19  ;;  %s258_s15 = scalar_lea.vmem %s1012_s5, %s1016_s19 }
  0x11   : > { %827 = vmatprep.mubr.msk.bf16.mxu0 %vm311_vm0, %v860_v2  ;;  %v863_v5 = vld [vmem:[%s245_s28 + $0x18] sm:$0xff]   ;;  %831 = vmatprep.mubr.msk.bf16.mxu1 %vm311_vm0, %v862_v4  ;;  %v439_v0 = vld [vmem:[%s978_s9 + $0x10] sm:$0xff]  ;;  %v437_v1 = vld [vmem:[%s978_s9] sm:$0xff] }
  0x12   : > { %828 = vmatmul.mubr.msk.bf16.vlgmr.msra.gmra.mrb[0].mxu0 %vm311_vm0, %v861_v3  ;;  %832 = vmatmul.mubr.msk.bf16.vlgmr.msra.gmra.mrb[0].mxu1 %vm311_vm0, %v863_v5  ;;  %v472_v2 = vmul.f32 2.0, %v439_v0  ;;  %v470_v3 = vmul.f32 2.0, %v437_v1  ;;  %v440_v4 = vld [vmem:[%s978_s9 + $0x18] sm:$0xff]  ;;  %v805_v5 = vadd.f32 -1.0, %v439_v0 }
  0xe5   : > { %v829_v7 = vpop.f32.mrb[0].mxu0  ;;  %v833_v12 = vpop.f32.mrb[0].mxu1 }
  0xe6   : > { %v367_v8 = vadd.f32 %v829_v7, %v784_v6  ;;  %v358_v9 = vpop.f32.mrb[1].mxu0  ;;  %v383_v16 = vadd.f32 %v833_v12, %v784_v6  ;;  %v374_v17 = vpop.f32.mrb[1].mxu1  ;;  %v480_v7 = vsub.f32 1.0, %v472_v2  ;;  %v441_v12 = vld [vmem:[%s978_s9 + $0x20] sm:$0xff] }
  0xe7   : > { %v359_v10 = vadd.f32 %v784_v6, %v358_v9  ;;  %v830_v11 = vpop.f32.mrb[2].mxu0  ;;  %v375_v20 = vadd.f32 %v784_v6, %v374_v17  ;;  %v834_v21 = vpop.f32.mrb[2].mxu1  ;;  %v438_v9 = vld [vmem:[%s978_s9 + $0x8] sm:$0xff] }
  0xe8   : > { %v797_v13 = vmul.f32 -1.442695, %v367_v8  ;;  %v370_v14 = vadd.f32 %v830_v11, %v784_v6  ;;  %v361_v15 = vpop.f32.mrb[3].mxu0  ;;  %v801_v23 = vmul.f32 -1.442695, %v383_v16  ;;  %v386_v24 = vadd.f32 %v834_v21, %v784_v6  ;;  %v377_v25 = vpop.f32.mrb[3].mxu1 }
  0xe9   : > { %v795_v18 = vmul.f32 -1.442695, %v359_v10  ;;  %v362_v19 = vadd.f32 %v784_v6, %v361_v15  ;;  %v799_v27 = vmul.f32 -1.442695, %v375_v20  ;;  %v378_v28 = vadd.f32 %v784_v6, %v377_v25  ;;  %v442_v21 = vld [vmem:[%s978_s9 + $0x28] sm:$0xff]  ;;  %v443_v25 = vld [vmem:[%s978_s9 + $0x30] sm:$0xff] }
  0xea   : > { %864 = vpow2.f32 %v797_v13  ;;  %v798_v22 = vmul.f32 -1.442695, %v370_v14  ;;  %v802_v29 = vmul.f32 -1.442695, %v386_v24  ;;  %v803_v6 = vadd.f32 -1.0, %v437_v1 }
  0xeb   : > { %866 = vpow2.f32 %v795_v18  ;;  %v796_v26 = vmul.f32 -1.442695, %v362_v19  ;;  %v800_v30 = vmul.f32 -1.442695, %v378_v28  ;;  %v473_v8 = vmul.f32 2.0, %v440_v4 }
  0xec   : > { %868 = vpow2.f32 %v798_v22  ;;  %v478_v10 = vsub.f32 1.0, %v470_v3  ;;  %v504_v11 = vmul.f32 4.0, %v805_v5  ;;  %v502_v14 = vmul.f32 4.0, %v803_v6 }
  0xed   : > { %870 = vpow2.f32 %v796_v26  ;;  %v471_v15 = vmul.f32 2.0, %v438_v9  ;;  %v481_v18 = vsub.f32 1.0, %v473_v8  ;;  %v806_v19 = vadd.f32 -1.0, %v440_v4 }
  0xee   : > { %872 = vpow2.f32 %v801_v23  ;;  %v474_v22 = vmul.f32 2.0, %v441_v12  ;;  %v804_v24 = vadd.f32 -1.0, %v438_v9 }
  0xef   : > { %874 = vpow2.f32 %v799_v27  ;;  %v479_v28 = vsub.f32 1.0, %v471_v15 }
  0xf0   : > { %876 = vpow2.f32 %v802_v29  ;;  %v807_v29 = vadd.f32 -1.0, %v441_v12 }
  0xf1   : > { %878 = vpow2.f32 %v800_v30 }
  0xf4   : > { %v865_v31 = vpop.eup %864 }
  0xf5   : > { %v867_v32 = vpop.eup %866  ;;  %v415_v33 = vadd.f32 1.0, %v865_v31  ;;  %v505_v31 = vmul.f32 4.0, %v806_v19 }
  0xf6   : > { %v869_v34 = vpop.eup %868  ;;  %v413_v35 = vadd.f32 1.0, %v867_v32 }
  0xf7   : > { %v871_v36 = vpop.eup %870  ;;  %880 = vrcp.f32 %v415_v33  ;;  %v416_v37 = vadd.f32 1.0, %v869_v34  ;;  %v475_v34 = vmul.f32 2.0, %v442_v21 }
  0xf8   : > { %v873_v38 = vpop.eup %872  ;;  %882 = vrcp.f32 %v413_v35  ;;  %v414_v39 = vadd.f32 1.0, %v871_v36 }
  0xf9   : > { %v875_v40 = vpop.eup %874  ;;  %884 = vrcp.f32 %v416_v37  ;;  %v419_v46 = vadd.f32 1.0, %v873_v38  ;;  %v482_v37 = vsub.f32 1.0, %v474_v22  ;;  %v476_v38 = vmul.f32 2.0, %v443_v25 }
  0xfa   : > { %v877_v41 = vpop.eup %876  ;;  %886 = vrcp.f32 %v414_v39  ;;  %v417_v42 = vadd.f32 1.0, %v875_v40  ;;  %v503_v40 = vmul.f32 4.0, %v804_v24 }
  0xfb   : > { %v879_v43 = vpop.eup %878  ;;  %v420_v45 = vadd.f32 1.0, %v877_v41  ;;  %v444_v41 = vld [vmem:[%s978_s9 + $0x38] sm:$0xff] }
  0xfc   : > { %888 = vrcp.f32 %v417_v42  ;;  %v418_v44 = vadd.f32 1.0, %v879_v43  ;;  %v808_v43 = vadd.f32 -1.0, %v442_v21  ;;  %v810_v4 = vadd.f32 -1.0, %v444_v41 }
  0xfe   : > { %890 = vrcp.f32 %v418_v44  ;;  %v506_v44 = vmul.f32 4.0, %v807_v29 }
  0xff   : > { %892 = vrcp.f32 %v420_v45  ;;  %v809_v45 = vadd.f32 -1.0, %v443_v25 }
 0x100   : > { %894 = vrcp.f32 %v419_v46 }
 0x101   : > { %v881_v47 = vpop.eup %880 }
 0x102   : > { %v883_v48 = vpop.eup %882  ;;  %v452_v49 = vsel %vm445_vm1, %v881_v47, 0.0 }
 0x103   : > { %v885_v50 = vpop.eup %884  ;;  %453 = vadd.xlane.f32.xlu1 %v452_v49  ;;  %v446_v51 = vsel %vm445_vm1, %v883_v48, 0.0  ;;  %v483_v49 = vsub.f32 1.0, %v475_v34 }
 0x104   : > { %v887_v52 = vpop.eup %886  ;;  %447 = vadd.xlane.f32.xlu0 %v446_v51  ;;  %v455_v54 = vsel %vm445_vm1, %v885_v50, 0.0 }
 0x105   : > { %v449_v55 = vsel %vm445_vm1, %v887_v52, 0.0 }
 0x106   : > { %v889_v53 = vpop.eup %888 }
 0x107   : > { %456 = vadd.xlane.f32.xlu1 %v455_v54  ;;  %v458_v58 = vsel %vm445_vm1, %v889_v53, 0.0  ;;  %v477_v54 = vmul.f32 2.0, %v444_v41 }
 0x108   : > { %v891_v56 = vpop.eup %890  ;;  %450 = vadd.xlane.f32.xlu0 %v449_v55  ;;  %v484_v55 = vsub.f32 1.0, %v476_v38 }
 0x109   : > { %v461_v57 = vsel %vm445_vm1, %v891_v56, 0.0  ;;  %v893_v59 = vpop.eup %892  ;;  %v485_v3 = vsub.f32 1.0, %v477_v54 }
 0x10a   : > { %v895_v60 = vpop.eup %894  ;;  %v467_v61 = vsel %vm445_vm1, %v893_v59, 0.0  ;;  %v508_v59 = vmul.f32 4.0, %v809_v45 }
 0x10b   : > { %462 = vadd.xlane.f32.xlu1 %v461_v57  ;;  %v464_v62 = vsel %vm445_vm1, %v895_v60, 0.0  ;;  %v507_v57 = vmul.f32 4.0, %v808_v43 }
 0x10c   : > { %459 = vadd.xlane.f32.xlu0 %v458_v58 }
 0x10f   : > { %468 = vadd.xlane.f32.xlu1 %v467_v61 }
 0x110   : > { %465 = vadd.xlane.f32.xlu0 %v464_v62 }
 0x190   : > { %v454_v13 = vpop.xlane.xlu1 %453 }
 0x191   : > { %v488_v16 = vmul.f32 %v480_v7, %v454_v13  ;;  %v448_v17 = vpop.xlane.xlu0 %447 }
 0x192   : > { %v486_v20 = vmul.f32 %v478_v10, %v448_v17 }
 0x193   : > { %v512_v23 = vadd.f32 %v504_v11, %v488_v16  ;;  %v509_v16 = vmul.f32 4.0, %v810_v4 }
 0x194   : > { %v510_v26 = vadd.f32 %v502_v14, %v486_v20  ;;  %v457_v27 = vpop.xlane.xlu1 %456 }
 0x195   : > { %v533_v30 = vsel %vm518_vm2, %v512_v23, 0.0  ;;  %v489_v32 = vmul.f32 %v481_v18, %v457_v27  ;;  %v451_v33 = vpop.xlane.xlu0 %450 }
 0x196   : > { %v534_v35 = vrot.slane %v533_v30, 4  ;;  %v519_v36 = vsel %vm518_vm2, %v510_v26, 0.0  ;;  %v487_v48 = vmul.f32 %v479_v28, %v451_v33 }
 0x197   : > { %v520_v39 = vrot.slane %v519_v36, 4  ;;  %v513_v47 = vadd.f32 %v505_v31, %v489_v32 }
 0x198   : > { %v535_v42 = vadd.f32 %v534_v35, %v533_v30  ;;  %v463_v50 = vpop.xlane.xlu1 %462  ;;  %v511_v62 = vadd.f32 %v503_v40, %v487_v48 }
 0x199   : > { %v521_v46 = vadd.f32 %v520_v39, %v519_v36  ;;  %v460_v51 = vpop.xlane.xlu0 %459  ;;  %v540_v61 = vsel %vm518_vm2, %v513_v47, 0.0  ;;  %v491_v63 = vmul.f32 %v483_v49, %v463_v50 }
 0x19a   : > { %v536_v52 = vrot.slane %v535_v42, 2  ;;  %v490_v53 = vmul.f32 %v482_v37, %v460_v51  ;;  %v541_v9 = vrot.slane %v540_v61, 4  ;;  %v526_v12 = vsel %vm518_vm2, %v511_v62, 0.0 }
 0x19b   : > { %v522_v56 = vrot.slane %v521_v46, 2  ;;  %v515_v13 = vadd.f32 %v507_v57, %v491_v63  ;;  %v527_v21 = vrot.slane %v526_v12, 4 }
 0x19c   : > { %v514_v58 = vadd.f32 %v506_v44, %v490_v53  ;;  %v537_v60 = vadd.f32 %v536_v52, %v535_v42  ;;  %v469_v7 = vpop.xlane.xlu1 %468  ;;  %v542_v22 = vadd.f32 %v541_v9, %v540_v61  ;;  %v575_v61 = vlaneseq }
 0x19d   : > { %v466_v0 = vpop.xlane.xlu0 %465  ;;  %v523_v1 = vadd.f32 %v522_v56, %v521_v46  ;;  %v493_v17 = vmul.f32 %v485_v3, %v469_v7  ;;  %v554_v23 = vsel %vm518_vm2, %v515_v13, 0.0  ;;  %v528_v28 = vadd.f32 %v527_v21, %v526_v12  ;;  %v702_v12 = vld [vmem:[%s255_s12] sm:$0x1] }
 0x19e   : > { %v547_v2 = vsel %vm518_vm2, %v514_v58, 0.0  ;;  %v492_v5 = vmul.f32 %v484_v55, %v466_v0  ;;  %v538_v8 = vrot.slane %v537_v60, 1  ;;  %v555_v29 = vrot.slane %v554_v23, 4 }
 0x19f   : > { %v548_v6 = vrot.slane %v547_v2, 4  ;;  %v524_v11 = vrot.slane %v523_v1, 1  ;;  %v517_v26 = vadd.f32 %v509_v16, %v493_v17  ;;  %v543_v30 = vrot.slane %v542_v22, 2 }
 0x1a0   : > { %v516_v10 = vadd.f32 %v508_v59, %v492_v5  ;;  %v539_v15 = vadd.f32 %v538_v8, %v537_v60  ;;  %v529_v35 = vrot.slane %v528_v28, 2  ;;  %v556_v36 = vadd.f32 %v555_v29, %v554_v23 }
 0x1a1   : > { %v549_v14 = vadd.f32 %v548_v6, %v547_v2  ;;  %v525_v19 = vadd.f32 %v524_v11, %v523_v1  ;;  %v568_v33 = vsel %vm518_vm2, %v517_v26, 0.0  ;;  %v544_v40 = vadd.f32 %v543_v30, %v542_v22 }
 0x1a2   : > { %v561_v18 = vsel %vm518_vm2, %v516_v10, 0.0  ;;  %590 = vperm.xlu1 %857, %v539_v15   ;;  %v569_v37 = vrot.slane %v568_v33, 4  ;;  %v530_v41 = vadd.f32 %v529_v35, %v528_v28  ;;  %v557_v42 = vrot.slane %v556_v36, 2 }
 0x1a3   : > { %v562_v20 = vrot.slane %v561_v18, 4  ;;  %582 = vperm.xlu0 %856, %v525_v19   ;;  %v550_v24 = vrot.slane %v549_v14, 2  ;;  %v545_v45 = vrot.slane %v544_v40, 1  ;;  %v907_v56 = vmov 0.0  }
 0x1a4   : > { %v570_v43 = vadd.f32 %v569_v37, %v568_v33  ;;  %v531_v48 = vrot.slane %v530_v41, 1  ;;  %v558_v49 = vadd.f32 %v557_v42, %v556_v36  ;;  %835 = vmatprep.subr.mxu1 %v907_v56  ;;  %837 = vmatprep.mubr.msk.f32.mxu1 %vm908_vm3, %v907_v56  ;;  %v576_v3 = vshrl.u32 %v575_v61, 7 }
 0x1a5   : > { %v563_v25 = vadd.f32 %v562_v20, %v561_v18  ;;  %v551_v32 = vadd.f32 %v550_v24, %v549_v14  ;;  %v546_v47 = vadd.f32 %v545_v45, %v544_v40  ;;  %v578_v4 = vand.u32 127, %v575_v61 }
 0x1a6   : > { %v571_v46 = vrot.slane %v570_v43, 2  ;;  %v532_v50 = vadd.f32 %v531_v48, %v530_v41  ;;  %v559_v51 = vrot.slane %v558_v49, 1  ;;  %v909_v11 = vmov 1.0  }
 0x1a7   : > { %v564_v27 = vrot.slane %v563_v25, 2  ;;  %v552_v39 = vrot.slane %v551_v32, 1  ;;  %vm579_vm11 = vcmp.eq.s32.totalorder %v576_v3, %v578_v4  ;;  %896 = vrcp.f32 %v702_v12 }
 0x1a8   : > { %v572_v52 = vadd.f32 %v571_v46, %v570_v43  ;;  %v560_v53 = vadd.f32 %v559_v51, %v558_v49 }
 0x1a9   : > { %v565_v31 = vadd.f32 %v564_v27, %v563_v25  ;;  %v553_v44 = vadd.f32 %v552_v39, %v551_v32 }
 0x1aa   : > { %v573_v54 = vrot.slane %v572_v52, 1 }
 0x1ab   : > { %v566_v34 = vrot.slane %v565_v31, 1 }
 0x1ac   : > { %v574_v55 = vadd.f32 %v573_v54, %v572_v52 }
 0x1ad   : > { %v567_v38 = vadd.f32 %v566_v34, %v565_v31 }
 0x1af   : > { %606 = vperm.xlu1 %857, %v567_v38  }
 0x1b1   : > { %v897_v13 = vpop.eup %896 }
 0x1b3   : > { %598 = vperm.xlu1 %857, %v553_v44  }
 0x1b7   : > { %594 = vperm.xlu1 %857, %v546_v47  }
 0x1bb   : > { %586 = vperm.xlu1 %857, %v532_v50  }
 0x1bf   : > { %602 = vperm.xlu1 %857, %v560_v53  }
 0x1c3   : > { %610 = vperm.xlu1 %857, %v574_v55  }
 0x221   : > { %v591_v57 = vpop.permute.xlu1 %590 }
 0x222   : > { %v583_v62 = vpop.permute.xlu0 %582 }
 0x22e   : > { %v607_v58 = vpop.permute.xlu1 %606 }
 0x232   : > { %v599_v59 = vpop.permute.xlu1 %598 }
 0x236   : > { %v595_v60 = vpop.permute.xlu1 %594 }
 0x23a   : > { %v587_v63 = vpop.permute.xlu1 %586 }
 0x23b   : > { %v613_v0 = vsel %vm612_vm4, %v587_v63, %v583_v62 }
 0x23c   : > { %v615_v1 = vsel %vm614_vm5, %v591_v57, %v613_v0 }
 0x23d   : > { %v617_v2 = vsel %vm616_vm6, %v595_v60, %v615_v1 }
 0x23e   : > { %v603_v5 = vpop.permute.xlu1 %602  ;;  %v619_v6 = vsel %vm618_vm7, %v599_v59, %v617_v2 }
 0x23f   : > { %v621_v7 = vsel %vm620_vm8, %v603_v5, %v619_v6 }
 0x240   : > { %v623_v9 = vsel %vm622_vm9, %v607_v58, %v621_v7 }
 0x242   : > { %v611_v8 = vpop.permute.xlu1 %610 }
 0x243   : > { %v625_v10 = vsel %vm624_vm10, %v611_v8, %v623_v9 }
 0x244   : > { %836 = vmatpush3.msk.msra.mxu1 %vm579_vm11, %v625_v10 }
 0x245   : > { %838 = vmatmul.mubr.msk.f32.vlgmr.msra.gmra.mrb[4].mxu1 %vm628_vm12, %v909_v11 }
 0x318   : > { %v698_v14 = vpop.f32.mrb[4].mxu1 }
 0x319   : > { %v704_v15 = vmul.f32 %v897_v13, %v698_v14  ;;  %v839_v16 = vpop.f32.mrb[5].mxu1 }
 0x31b   : > { %706 = vst.msk [vmem:[%s258_s15] sm:$0x1] %vm705_vm13, %v704_v15 }
 0x31c PF: > { %s15_s18 = sadd.s32 1, %s904_s18  }
 0x31d   : > { %p12_p5 = scmp.ge.s32.totalorder %s15_s18, 4  }
 0x31f   :  { %14 = sbr.rel (!%p12_p5) target bundleno = 1 (0x1), region = 76 }

</bundles_post_ra>
